<compile_context>
chip_gen: v7x
topology: tpu7x:2x2x1
jax: 0.10.0
libtpu: 0.0.40
codegen_flags: <defaults>
</compile_context>

<pallas_src>
import jax
import jax.numpy as jnp
from jax.experimental import pallas as pl
from jax.experimental.pallas import tpu as pltpu

LANE = 128
SUBLANE = 8  # x / out tiles are f32 -> native sublane tile is 8.


def _round_up(n, m):
    return ((n + m - 1) // m) * m


def _vmem_capacity_bytes():
    try:
        return int(pltpu.get_tpu_info().vmem_capacity_bytes)
    except Exception:
        return 64 << 20  # conservative: v7x per-TC VMEM


def _choose_bm(batch, bm_cap=1024):
    """Adaptive batch tile: fitted (minimal padding), >=2 tiles when the batch
    is large enough for a v7x megacore to benefit from sharding the axis."""
    b_r = _round_up(batch, SUBLANE)
    if b_r <= 256:
        return b_r  # tiny batch: one tile, no batch padding
    n_tiles = max(2, pl.cdiv(b_r, bm_cap))
    return _round_up(pl.cdiv(b_r, n_tiles), SUBLANE)


def bpnet_kernel(x_ref, w1_ref, b1_ref, w2_ref, b2_ref, o_ref):
    # Cast x to the compute dtype (bf16 by default) inside the kernel: the
    # HBM stream stays f32-once instead of f32-read + bf16-write + bf16-read.
    x = x_ref[...].astype(w1_ref.dtype)
    # hidden = relu(x @ W1 + b1): MXU matmul with f32 accumulation,
    # bias + ReLU epilogue in f32 (no bf16 VPU on v5e).
    h = jnp.dot(x, w1_ref[...], preferred_element_type=jnp.float32)
    h = jnp.maximum(h + b1_ref[...], 0.0)
    # out = hidden @ W2 + b2: downcast hidden only for the MXU feed.
    y = jnp.dot(h.astype(w2_ref.dtype), w2_ref[...],
                preferred_element_type=jnp.float32)
    o_ref[...] = (y + b2_ref[...]).astype(o_ref.dtype)


def prepare_bpnet_params(w1, b1, w2, b2, *, compute_dtype=jnp.bfloat16):
    """One-time parameter prep (call once, reuse across forwards).

    w1: (in_f, hidden), b1: (hidden,) or (1, hidden),
    w2: (hidden, out_f), b2: (out_f,) or (1, out_f).
    Hidden/output feature dims are zero-padded to lane (128) multiples and the
    weights cast to `compute_dtype`; biases stay f32.  Zero padding keeps the
    math exact on the original slice (padded hidden units are relu(0+0)=0 and
    hit zero W2 rows; padded output cols are 0 and sliced off)."""
    in_f, hidden = w1.shape
    out_f = w2.shape[1]
    hid_p = _round_up(hidden, LANE)
    out_p = _round_up(out_f, LANE)
    cdt, f32 = jnp.dtype(compute_dtype), jnp.float32

    w1p = jnp.zeros((in_f, hid_p), cdt).at[:, :hidden].set(w1.astype(cdt))
    b1p = jnp.zeros((1, hid_p), f32).at[:, :hidden].set(
        jnp.asarray(b1, f32).reshape(1, -1))
    w2p = jnp.zeros((hid_p, out_p), cdt).at[:hidden, :out_f].set(w2.astype(cdt))
    b2p = jnp.zeros((1, out_p), f32).at[:, :out_f].set(
        jnp.asarray(b2, f32).reshape(1, -1))
    return dict(w1=w1p, b1=b1p, w2=w2p, b2=b2p,
                in_features=in_f, hidden=hidden, out_features=out_f)


def bpnet_forward(x, params, *, out_dtype=jnp.float32, bm_cap=1024):
    """x: (B, in_features) f32 (or bf16). Returns (B, out_features) out_dtype."""
    B, in_f = x.shape
    assert in_f == params["in_features"], (in_f, params["in_features"])
    w1p, b1p, w2p, b2p = params["w1"], params["b1"], params["w2"], params["b2"]
    hid_p, out_p = w1p.shape[1], w2p.shape[1]
    out_f = params["out_features"]
    out_dt = jnp.dtype(out_dtype)

    # ---- batch tiling (only padding done per call, and only if B is awkward)
    bm = _choose_bm(B, bm_cap)
    n_tiles = pl.cdiv(B, bm)
    B_p = n_tiles * bm
    x_in = x if B_p == B else jnp.zeros((B_p, in_f), x.dtype).at[:B].set(x)

    flops = 2 * B_p * (in_f * hid_p + hid_p * out_p)
    bytes_accessed = (x_in.size * x_in.dtype.itemsize
                      + w1p.size * w1p.dtype.itemsize
                      + w2p.size * w2p.dtype.itemsize
                      + b1p.size * 4 + b2p.size * 4
                      + B_p * out_p * out_dt.itemsize)

    def build(single_buffer_weights):
        # Weights/biases have constant index_maps (resident in VMEM); single
        # buffering halves their VMEM footprint (matters on v7x's 64 MiB/TC).
        wmode = ({"pipeline_mode": pl.Buffered(buffer_count=1)}
                 if single_buffer_weights else {})
        wbuf = 1 if single_buffer_weights else 2

        tile_bytes = 2 * (bm * in_f * x_in.dtype.itemsize          # x tiles
                          + bm * out_p * out_dt.itemsize)          # out tiles
        weight_bytes = wbuf * (w1p.size * w1p.dtype.itemsize
                               + w2p.size * w2p.dtype.itemsize
                               + hid_p * 4 + out_p * 4)
        live_bytes = bm * hid_p * 4 + bm * in_f * 2                # h f32 + x cast
        vmem_limit = int(min(max(2 * (tile_bytes + weight_bytes + live_bytes),
                                 8 << 20),
                             int(0.75 * _vmem_capacity_bytes())))

        return pl.pallas_call(
            bpnet_kernel,
            out_shape=jax.ShapeDtypeStruct((B_p, out_p), out_dt),
            grid_spec=pltpu.PrefetchScalarGridSpec(
                num_scalar_prefetch=0,
                grid=(n_tiles,),
                in_specs=[
                    # x tile: trailing dim is the FULL (unpadded) feature dim.
                    pl.BlockSpec((bm, in_f), lambda i: (i, 0)),
                    pl.BlockSpec((in_f, hid_p), lambda i: (0, 0), **wmode),
                    pl.BlockSpec((1, hid_p), lambda i: (0, 0), **wmode),
                    pl.BlockSpec((hid_p, out_p), lambda i: (0, 0), **wmode),
                    pl.BlockSpec((1, out_p), lambda i: (0, 0), **wmode),
                ],
                out_specs=pl.BlockSpec((bm, out_p), lambda i: (i, 0)),
            ),
            compiler_params=pltpu.CompilerParams(
                dimension_semantics=("parallel",),
                vmem_limit_bytes=vmem_limit),
            cost_estimate=pl.CostEstimate(
                flops=flops, transcendentals=0,
                bytes_accessed=bytes_accessed),
        )

    args = (x_in, w1p, b1p, w2p, b2p)
    try:
        out_padded = jax.block_until_ready(build(True)(*args))
    except Exception:
        # Fallback if this JAX build rejects Buffered(1): default
        # double-buffering is still correct, just uses 2x weight VMEM.
        out_padded = build(False)(*args)

    # TODO(synk): for very large hidden/in_f (resident W1+W2 > ~16-24 MiB on
    # v7x) switch to a hidden-dim streaming loop (emit_pipeline over W1
    # column-blocks / W2 row-blocks with an f32 accumulator) instead of fully
    # resident weights.
    return out_padded[:B, :out_f]


def init_bpnet_params(key, input_dim, input_channel, hidden_dim, output_dim,
                      dtype=jnp.float32):
    """Deterministic init mimicking nn.Linear default (uniform +/- 1/sqrt(fan_in)).
    Weights are returned already transposed to (in_features, out_features)."""
    in_features = input_dim * input_channel
    k1, k2, k3, k4 = jax.random.split(key, 4)
    bound1 = 1.0 / jnp.sqrt(in_features)
    bound2 = 1.0 / jnp.sqrt(hidden_dim)
    w1 = jax.random.uniform(k1, (in_features, hidden_dim), dtype,
                            minval=-bound1, maxval=bound1)
    b1 = jax.random.uniform(k2, (1, hidden_dim), dtype,
                            minval=-bound1, maxval=bound1)
    w2 = jax.random.uniform(k3, (hidden_dim, output_dim), dtype,
                            minval=-bound2, maxval=bound2)
    b2 = jax.random.uniform(k4, (1, output_dim), dtype,
                            minval=-bound2, maxval=bound2)
    return w1, b1, w2, b2
    # TODO(synk): two_layer=True variant (Linear->ReLU->Linear(100)->ReLU->Linear)
    # would add one more padded matmul stage in the kernel; not exercised here.


if __name__ == "__main__":
    # Small shapes consistent with the module: input_dim=16, input_channel=4,
    # hidden_dim=32, output_dim=8, batch=16 -> x is (16, 64).
    input_dim, input_channel = 16, 4
    hidden_dim, output_dim = 32, 8
    batch = 16
    in_features = input_dim * input_channel

    key = jax.random.PRNGKey(0)
    kx, kp = jax.random.split(key)
    x = jax.random.normal(kx, (batch, in_features), jnp.float32)
    w1, b1, w2, b2 = init_bpnet_params(kp, input_dim, input_channel,
                                       hidden_dim, output_dim)

    # One-time parameter prep (pad + bf16 cast), reused across calls.
    params = prepare_bpnet_params(w1, b1, w2, b2)

    out = bpnet_forward(x, params)
    out = jax.block_until_ready(out)

    # Pure-JAX f32 reference; relaxed tolerance because the kernel runs the
    # matmuls with bf16 operands (f32 accumulation). Use
    # prepare_bpnet_params(..., compute_dtype=jnp.float32) for f32 parity.
    ref = jnp.maximum(x @ w1 + b1, 0.0) @ w2 + b2
    assert out.shape == (batch, output_dim)
    assert jnp.allclose(out, ref, atol=2e-2, rtol=2e-2), (
        float(jnp.max(jnp.abs(out - ref))))
    print("KERNEL_OK")
</pallas_src>

<mosaic_0001>
module attributes {stable_mosaic.version = 11 : i64} {
  func.func @bpnet_kernel(%arg0: i32, %arg1: memref<16x64xf32, #tpu.memory_space<vmem>>, %arg2: memref<64x128xbf16, #tpu.memory_space<vmem>>, %arg3: memref<1x128xf32, #tpu.memory_space<vmem>>, %arg4: memref<128x128xbf16, #tpu.memory_space<vmem>>, %arg5: memref<1x128xf32, #tpu.memory_space<vmem>>, %arg6: memref<16x128xf32, #tpu.memory_space<vmem>>) attributes {dimension_semantics = [#tpu.dimension_semantics<parallel>], iteration_bounds = array<i64: 1>, scalar_prefetch = 0 : i64, scratch_operands = 0 : i64, tpu.core_type = #tpu.core_type<tc>, window_params = [{transform_indices = @transform_0, window_bounds = array<i64: 16, 64>}, {pipeline_mode = #tpu.pipeline_mode<synchronous>, transform_indices = @transform_1, window_bounds = array<i64: 64, 128>}, {pipeline_mode = #tpu.pipeline_mode<synchronous>, transform_indices = @transform_2, window_bounds = array<i64: 1, 128>}, {pipeline_mode = #tpu.pipeline_mode<synchronous>, transform_indices = @transform_3, window_bounds = array<i64: 128, 128>}, {pipeline_mode = #tpu.pipeline_mode<synchronous>, transform_indices = @transform_4, window_bounds = array<i64: 1, 128>}, {transform_indices = @transform_5, window_bounds = array<i64: 16, 128>}]} {
    %c0 = arith.constant 0 : index
    %c0_0 = arith.constant 0 : index
    %0 = vector.load %arg1[%c0, %c0_0] : memref<16x64xf32, #tpu.memory_space<vmem>>, vector<16x64xf32>
    %1 = arith.truncf %0 : vector<16x64xf32> to vector<16x64xbf16>
    %c0_1 = arith.constant 0 : index
    %c0_2 = arith.constant 0 : index
    %2 = vector.load %arg2[%c0_1, %c0_2] : memref<64x128xbf16, #tpu.memory_space<vmem>>, vector<64x128xbf16>
    %cst = arith.constant dense<0.000000e+00> : vector<16x128xf32>
    %3 = tpu.matmul %1, %2, %cst {dimension_numbers = #tpu.dot_dimension_numbers<[1], [0], [0], [1], [0, 0, 1, 1], [], []>} : vector<16x64xbf16>, vector<64x128xbf16>, vector<16x128xf32> -> vector<16x128xf32>
    %c0_3 = arith.constant 0 : index
    %c0_4 = arith.constant 0 : index
    %4 = vector.load %arg3[%c0_3, %c0_4] : memref<1x128xf32, #tpu.memory_space<vmem>>, vector<1x128xf32>
    %5 = vector.broadcast %4 : vector<1x128xf32> to vector<16x128xf32>
    %6 = arith.addf %3, %5 : vector<16x128xf32>
    %cst_5 = arith.constant 0.000000e+00 : f32
    %7 = vector.broadcast %cst_5 : f32 to vector<16x128xf32>
    %8 = arith.maximumf %6, %7 : vector<16x128xf32>
    %9 = arith.truncf %8 : vector<16x128xf32> to vector<16x128xbf16>
    %c0_6 = arith.constant 0 : index
    %c0_7 = arith.constant 0 : index
    %10 = vector.load %arg4[%c0_6, %c0_7] : memref<128x128xbf16, #tpu.memory_space<vmem>>, vector<128x128xbf16>
    %cst_8 = arith.constant dense<0.000000e+00> : vector<16x128xf32>
    %11 = tpu.matmul %9, %10, %cst_8 {dimension_numbers = #tpu.dot_dimension_numbers<[1], [0], [0], [1], [0, 0, 1, 1], [], []>} : vector<16x128xbf16>, vector<128x128xbf16>, vector<16x128xf32> -> vector<16x128xf32>
    %c0_9 = arith.constant 0 : index
    %c0_10 = arith.constant 0 : index
    %12 = vector.load %arg5[%c0_9, %c0_10] : memref<1x128xf32, #tpu.memory_space<vmem>>, vector<1x128xf32>
    %13 = vector.broadcast %12 : vector<1x128xf32> to vector<16x128xf32>
    %14 = arith.addf %11, %13 : vector<16x128xf32>
    %c0_11 = arith.constant 0 : index
    %c0_12 = arith.constant 0 : index
    %15 = vector.load %arg6[%c0_11, %c0_12] : memref<16x128xf32, #tpu.memory_space<vmem>>, vector<16x128xf32>
    tpu.vector_store %arg6[%c0_11, %c0_12], %14 {strides = array<i32>} : memref<16x128xf32, #tpu.memory_space<vmem>>, vector<16x128xf32>,
    return
  }
  func.func @transform_0(%arg0: i32) -> (i32, i32) {
    %c0_i32 = arith.constant 0 : i32
    %c0_i32_0 = arith.constant 0 : i32
    return %arg0, %c0_i32 : i32, i32
  }
  func.func @transform_1(%arg0: i32) -> (i32, i32) {
    %c0_i32 = arith.constant 0 : i32
    %c0_i32_0 = arith.constant 0 : i32
    %c0_i32_1 = arith.constant 0 : i32
    return %c0_i32, %c0_i32_0 : i32, i32
  }
  func.func @transform_2(%arg0: i32) -> (i32, i32) {
    %c0_i32 = arith.constant 0 : i32
    %c0_i32_0 = arith.constant 0 : i32
    %c0_i32_1 = arith.constant 0 : i32
    return %c0_i32, %c0_i32_0 : i32, i32
  }
  func.func @transform_3(%arg0: i32) -> (i32, i32) {
    %c0_i32 = arith.constant 0 : i32
    %c0_i32_0 = arith.constant 0 : i32
    %c0_i32_1 = arith.constant 0 : i32
    return %c0_i32, %c0_i32_0 : i32, i32
  }
  func.func @transform_4(%arg0: i32) -> (i32, i32) {
    %c0_i32 = arith.constant 0 : i32
    %c0_i32_0 = arith.constant 0 : i32
    %c0_i32_1 = arith.constant 0 : i32
    return %c0_i32, %c0_i32_0 : i32, i32
  }
  func.func @transform_5(%arg0: i32) -> (i32, i32) {
    %c0_i32 = arith.constant 0 : i32
    %c0_i32_0 = arith.constant 0 : i32
    return %arg0, %c0_i32 : i32, i32
  }
}

module attributes {stable_mosaic.version = 11 : i64} {
  func.func @bpnet_kernel(%arg0: i32, %arg1: memref<16x64xf32, #tpu.memory_space<vmem>>, %arg2: memref<64x128xbf16, #tpu.memory_space<vmem>>, %arg3: memref<1x128xf32, #tpu.memory_space<vmem>>, %arg4: memref<128x128xbf16, #tpu.memory_space<vmem>>, %arg5: memref<1x128xf32, #tpu.memory_space<vmem>>, %arg6: memref<16x128xf32, #tpu.memory_space<vmem>>) attributes {dimension_semantics = [#tpu.dimension_semantics<parallel>], iteration_bounds = array<i64: 1>, scalar_prefetch = 0 : i64, scratch_operands = 0 : i64, tpu.core_type = #tpu.core_type<tc>, window_params = [{transform_indices = @transform_0, window_bounds = array<i64: 16, 64>}, {pipeline_mode = #tpu.pipeline_mode<synchronous>, transform_indices = @transform_1, window_bounds = array<i64: 64, 128>}, {pipeline_mode = #tpu.pipeline_mode<synchronous>, transform_indices = @transform_2, window_bounds = array<i64: 1, 128>}, {pipeline_mode = #tpu.pipeline_mode<synchronous>, transform_indices = @transform_3, window_bounds = array<i64: 128, 128>}, {pipeline_mode = #tpu.pipeline_mode<synchronous>, transform_indices = @transform_4, window_bounds = array<i64: 1, 128>}, {transform_indices = @transform_5, window_bounds = array<i64: 16, 128>}]} {
    %c0 = arith.constant 0 : index
    %c0_0 = arith.constant 0 : index
    %0 = vector.load %arg1[%c0, %c0_0] : memref<16x64xf32, #tpu.memory_space<vmem>>, vector<16x64xf32>
    %1 = arith.truncf %0 : vector<16x64xf32> to vector<16x64xbf16>
    %c0_1 = arith.constant 0 : index
    %c0_2 = arith.constant 0 : index
    %2 = vector.load %arg2[%c0_1, %c0_2] : memref<64x128xbf16, #tpu.memory_space<vmem>>, vector<64x128xbf16>
    %cst = arith.constant dense<0.000000e+00> : vector<16x128xf32>
    %3 = tpu.matmul %1, %2, %cst {dimension_numbers = #tpu.dot_dimension_numbers<[1], [0], [0], [1], [0, 0, 1, 1], [], []>} : vector<16x64xbf16>, vector<64x128xbf16>, vector<16x128xf32> -> vector<16x128xf32>
    %c0_3 = arith.constant 0 : index
    %c0_4 = arith.constant 0 : index
    %4 = vector.load %arg3[%c0_3, %c0_4] : memref<1x128xf32, #tpu.memory_space<vmem>>, vector<1x128xf32>
    %5 = vector.broadcast %4 : vector<1x128xf32> to vector<16x128xf32>
    %6 = arith.addf %3, %5 : vector<16x128xf32>
    %cst_5 = arith.constant 0.000000e+00 : f32
    %7 = vector.broadcast %cst_5 : f32 to vector<16x128xf32>
    %8 = arith.maximumf %6, %7 : vector<16x128xf32>
    %9 = arith.truncf %8 : vector<16x128xf32> to vector<16x128xbf16>
    %c0_6 = arith.constant 0 : index
    %c0_7 = arith.constant 0 : index
    %10 = vector.load %arg4[%c0_6, %c0_7] : memref<128x128xbf16, #tpu.memory_space<vmem>>, vector<128x128xbf16>
    %cst_8 = arith.constant dense<0.000000e+00> : vector<16x128xf32>
    %11 = tpu.matmul %9, %10, %cst_8 {dimension_numbers = #tpu.dot_dimension_numbers<[1], [0], [0], [1], [0, 0, 1, 1], [], []>} : vector<16x128xbf16>, vector<128x128xbf16>, vector<16x128xf32> -> vector<16x128xf32>
    %c0_9 = arith.constant 0 : index
    %c0_10 = arith.constant 0 : index
    %12 = vector.load %arg5[%c0_9, %c0_10] : memref<1x128xf32, #tpu.memory_space<vmem>>, vector<1x128xf32>
    %13 = vector.broadcast %12 : vector<1x128xf32> to vector<16x128xf32>
    %14 = arith.addf %11, %13 : vector<16x128xf32>
    %c0_11 = arith.constant 0 : index
    %c0_12 = arith.constant 0 : index
    %15 = vector.load %arg6[%c0_11, %c0_12] : memref<16x128xf32, #tpu.memory_space<vmem>>, vector<16x128xf32>
    tpu.vector_store %arg6[%c0_11, %c0_12], %14 {strides = array<i32>} : memref<16x128xf32, #tpu.memory_space<vmem>>, vector<16x128xf32>,
    return
  }
  func.func @transform_0(%arg0: i32) -> (i32, i32) {
    %c0_i32 = arith.constant 0 : i32
    %c0_i32_0 = arith.constant 0 : i32
    return %arg0, %c0_i32 : i32, i32
  }
  func.func @transform_1(%arg0: i32) -> (i32, i32) {
    %c0_i32 = arith.constant 0 : i32
    %c0_i32_0 = arith.constant 0 : i32
    %c0_i32_1 = arith.constant 0 : i32
    return %c0_i32, %c0_i32_0 : i32, i32
  }
  func.func @transform_2(%arg0: i32) -> (i32, i32) {
    %c0_i32 = arith.constant 0 : i32
    %c0_i32_0 = arith.constant 0 : i32
    %c0_i32_1 = arith.constant 0 : i32
    return %c0_i32, %c0_i32_0 : i32, i32
  }
  func.func @transform_3(%arg0: i32) -> (i32, i32) {
    %c0_i32 = arith.constant 0 : i32
    %c0_i32_0 = arith.constant 0 : i32
    %c0_i32_1 = arith.constant 0 : i32
    return %c0_i32, %c0_i32_0 : i32, i32
  }
  func.func @transform_4(%arg0: i32) -> (i32, i32) {
    %c0_i32 = arith.constant 0 : i32
    %c0_i32_0 = arith.constant 0 : i32
    %c0_i32_1 = arith.constant 0 : i32
    return %c0_i32, %c0_i32_0 : i32, i32
  }
  func.func @transform_5(%arg0: i32) -> (i32, i32) {
    %c0_i32 = arith.constant 0 : i32
    %c0_i32_0 = arith.constant 0 : i32
    return %arg0, %c0_i32 : i32, i32
  }
}

</mosaic_0001>

<bundles_post_ra>
// kernel: tpu_custom_call.1
= control target key start
LH: loop header
LB: loop body
LE: loop exit
PB: predicated region body
PF: predicated region fallthrough
CT: control target
= control target key end

     0   :  { %10 = vsyncpa [#allocation3], 0  ;;  %s568_s0 = inlined_call_operand.hbm [shape: f32[16,64], index: 0, kind: input, shape index: {}]   ;;  %s569_s1 = inlined_call_operand.hbm [shape: bf16[64,128], index: 1, kind: input, shape index: {}]   ;;  %s570_s2 = inlined_call_operand.vmem [shape: f32[1,128], index: 2, kind: input, shape index: {}]   ;;  %s571_s3 = inlined_call_operand.hbm [shape: bf16[128,128], index: 3, kind: input, shape index: {}]   ;;  %s572_s4 = inlined_call_operand.vmem [shape: f32[1,128], index: 4, kind: input, shape index: {}]   ;;  %s573_s5 = inlined_call_operand.hbm [shape: f32[16,128], index: 5, kind: output, shape index: {}]  }
   0x1   :  { %11 = vsyncpa [#allocation6], 0 }
   0x2   :  { %12 = vsyncpa [#allocation4], 0  ;;  %s462_s18 = smov [#allocation5]   ;;  %s368_s22 = scalar_lea.hbm %s569_s1, 512 }
   0x3   :  { %s30_s19 = sshll.u32 %s462_s18, 4  ;;  %p369_p0 = scmp.ne.s32.totalorder %s569_s1, %s368_s22  ;;  %s31_s19 = int_to_ptr.vmem [resolvable:$true] %s30_s19 }
   0x4   :  { %p372_p1 = scmp.lt.u32.totalorder %s368_s22, %s569_s1 }
   0x6   :  { %p374_p2 = pnand %p372_p1, %p369_p0 }
   0x8   :  { %377 = shalt.err (!%p374_p2)
}
   0x9   :  { %s378_s27 = scalar_lea.vmem %s31_s19, 512  ;;  %p383_p4 = scmp.lt.s32.totalorder %s31_s19, %s31_s19 }
   0xa   :  { %p379_p3 = scmp.ne.s32.totalorder %s31_s19, %s378_s27  ;;  %p384_p5 = scmp.lt.s32.totalorder %s378_s27, %s378_s27 }
   0xc   :  { %p385_p6 = por %p384_p5, %p383_p4 }
   0xe   :  { %p386_p7 = pnand %p385_p6, %p379_p3 }
  0x10   :  { %389 = shalt.err (!%p386_p7)
}
  0x11   :  { %s463_s28 = smov 64   ;;  %s464_s29 = smov 4  }
  0x12   :  { %36 = dma.hbm_to_vmem [thread:$0]  %s569_s1, 512, %s31_s19, [#allocation6], %s463_s28, %s463_s28, %s464_s29  }
  0x13   :  { %s465_s7 = smov [#allocation2]   ;;  %s390_s11 = scalar_lea.hbm %s568_s0, 256 }
  0x14   :  { %s18_s8 = sshll.u32 %s465_s7, 4  ;;  %p391_p8 = scmp.ne.s32.totalorder %s568_s0, %s390_s11  ;;  %s19_s8 = int_to_ptr.vmem [resolvable:$true] %s18_s8 }
  0x15   :  { %p394_p9 = scmp.lt.u32.totalorder %s390_s11, %s568_s0 }
  0x17   :  { %p396_p10 = pnand %p394_p9, %p391_p8 }
  0x19   :  { %399 = shalt.err (!%p396_p10)
}
  0x1a   :  { %s400_s16 = scalar_lea.vmem %s19_s8, 256  ;;  %p405_p12 = scmp.lt.s32.totalorder %s19_s8, %s19_s8 }
  0x1b   :  { %p401_p11 = scmp.ne.s32.totalorder %s19_s8, %s400_s16  ;;  %p406_p13 = scmp.lt.s32.totalorder %s400_s16, %s400_s16 }
  0x1d   :  { %p407_p0 = por %p406_p13, %p405_p12 }
  0x1f   :  { %p408_p1 = pnand %p407_p0, %p401_p11 }
  0x21   :  { %411 = shalt.err (!%p408_p1)
}
  0x22   :  { %s466_s1 = smov 128   ;;  %s467_s17 = smov 8  }
  0x23   :  { %24 = dma.hbm_to_vmem [thread:$0]  %s568_s0, 256, %s19_s8, [#allocation3], %s466_s1, %s466_s1, %s467_s17  }
  0x24   :  { %s468_s20 = smov [#allocation7]   ;;  %s412_s24 = scalar_lea.hbm %s571_s3, 1024 }
  0x25   :  { %s44_s21 = sshll.u32 %s468_s20, 4  ;;  %p413_p2 = scmp.ne.s32.totalorder %s571_s3, %s412_s24  ;;  %s45_s21 = int_to_ptr.vmem [resolvable:$true] %s44_s21 }
  0x26   :  { %p416_p3 = scmp.lt.u32.totalorder %s412_s24, %s571_s3 }
  0x28   :  { %p418_p4 = pnand %p416_p3, %p413_p2 }
  0x2a   :  { %421 = shalt.err (!%p418_p4)
}
  0x2b   :  { %s422_s6 = scalar_lea.vmem %s45_s21, 1024  ;;  %p427_p6 = scmp.lt.s32.totalorder %s45_s21, %s45_s21 }
  0x2c   :  { %p423_p5 = scmp.ne.s32.totalorder %s45_s21, %s422_s6  ;;  %p428_p7 = scmp.lt.s32.totalorder %s422_s6, %s422_s6 }
  0x2e   :  { %p429_p8 = por %p428_p7, %p427_p6 }
  0x30   :  { %p430_p9 = pnand %p429_p8, %p423_p5 }
  0x32   :  { %433 = shalt.err (!%p430_p9)
}
  0x33   :  { %50 = dma.hbm_to_vmem [thread:$0]  %s571_s3, 1024, %s45_s21, [#allocation6], %s463_s28, %s463_s28, %s464_s29  }
  0x34   :  { %456 = dma.done.wait [#allocation3], 256  }
  0x35   :  { %457 = vsyncadd [#allocation3], 4294967040 }
  0x36   :  { %458 = dma.done.wait [#allocation6], 1536  }
  0x37   :  { %459 = vsyncadd [#allocation6], 4294965760  ;;  %v469_v0 = vmov 0.0   ;;  %vm470_vm0 = vmmov 0   ;;  %v356_v1 = vld [vmem:[#allocation5] sm:$0xff]   ;;  %v357_v2 = vld [vmem:[#allocation5 + $0x8] sm:$0xff]  }
  0x38   :  { %314 = vmatprep.subr.bf16.mxu0 %v469_v0  ;;  %322 = vmatprep.mubr.msk.bf16.mxu0 %vm470_vm0, %v469_v0  ;;  %v360_v3 = vld [vmem:[#allocation7] sm:$0xff]   ;;  %v358_v4 = vld [vmem:[#allocation5 + $0x10] sm:$0xff]   ;;  %v361_v5 = vld [vmem:[#allocation7 + $0x8] sm:$0xff]   ;;  %vm105_vm1 = vcmask 523264   ;;  %s471_s9 = smov [#allocation8]  }
  0x39   :  { %326 = vmatprep.subr.bf16.mxu1 %v469_v0  ;;  %342 = vmatprep.mubr.msk.bf16.mxu1 %vm470_vm0, %v469_v0  ;;  %v359_v6 = vld [vmem:[#allocation5 + $0x18] sm:$0xff]   ;;  %v63_v7 = vld [vmem:[#allocation2] sm:$0xff]  ;;  %v364_v12 = vld [vmem:[#allocation7 + $0x20] sm:$0xff]   ;;  %s272_s10 = sshll.u32 %s471_s9, 4  ;;  %s273_s10 = int_to_ptr.vmem [resolvable:$true] %s272_s10 }
  0x3a   :  { %315 = vmatpush3.bf16.msra.mxu0 %v356_v1  ;;  %327 = vmatpush3.bf16.msra.mxu1 %v360_v3  ;;  %v64_v8 = vld [vmem:[#allocation2 + $0x8] sm:$0xff]  ;;  %v362_v9 = vld [vmem:[#allocation7 + $0x10] sm:$0xff]   ;;  %v365_v13 = vld [vmem:[#allocation7 + $0x28] sm:$0xff]   ;;  %p439_p11 = scmp.lt.s32.totalorder %s273_s10, %s273_s10 }
  0x3b   :  { %316 = vmatprep.subr.bf16.mxu0 %v469_v0  ;;  %328 = vmatprep.subr.bf16.mxu1 %v469_v0  ;;  %v65_v10 = vpack.c.bf16 %v64_v8, %v63_v7  ;;  %v363_v11 = vld [vmem:[#allocation7 + $0x18] sm:$0xff]   ;;  %v366_v14 = vld [vmem:[#allocation7 + $0x30] sm:$0xff]  }
  0x3c   :  { %v367_v15 = vld [vmem:[#allocation7 + $0x38] sm:$0xff]   ;;  %v285_v16 = vld [vmem:[%s570_s2] ss:$0 sm:$0xff]  ;;  %s434_s2 = scalar_lea.vmem %s273_s10, 256 }
  0x3d   :  { %v291_v26 = vld [vmem:[%s572_s4] ss:$0 sm:$0xff]  ;;  %p435_p10 = scmp.ne.s32.totalorder %s273_s10, %s434_s2  ;;  %p440_p12 = scmp.lt.s32.totalorder %s434_s2, %s434_s2 }
  0x3e   :  { %317 = vmatpush3.bf16.msra.mxu0 %v357_v2  ;;  %329 = vmatpush3.bf16.msra.mxu1 %v361_v5 }
  0x3f   :  { %318 = vmatprep.subr.bf16.mxu0 %v469_v0  ;;  %330 = vmatprep.subr.bf16.mxu1 %v469_v0  ;;  %p441_p13 = por %p440_p12, %p439_p11 }
  0x41   :  { %p442_p0 = pnand %p441_p13, %p435_p10 }
  0x42   :  { %319 = vmatpush3.bf16.msra.mxu0 %v358_v4  ;;  %331 = vmatpush3.bf16.msra.mxu1 %v362_v9 }
  0x43   :  { %320 = vmatprep.subr.bf16.mxu0 %v469_v0  ;;  %332 = vmatprep.subr.bf16.mxu1 %v469_v0 }
  0x46   :  { %321 = vmatpush3.bf16.msra.mxu0 %v359_v6  ;;  %333 = vmatpush3.bf16.msra.mxu1 %v363_v11 }
  0x47   :  { %334 = vmatprep.subr.bf16.mxu1 %v469_v0 }
  0x49   :  { %323 = vmatmul.mubr.msk.bf16.vlgmr.msra.gmra.mrb[0].mxu0 %vm105_vm1, %v65_v10 }
  0x4a   :  { %335 = vmatpush3.bf16.msra.mxu1 %v364_v12 }
  0x4b   :  { %336 = vmatprep.subr.bf16.mxu1 %v469_v0 }
  0x4e   :  { %337 = vmatpush3.bf16.msra.mxu1 %v365_v13 }
  0x4f   :  { %338 = vmatprep.subr.bf16.mxu1 %v469_v0 }
  0x52   :  { %339 = vmatpush3.bf16.msra.mxu1 %v366_v14 }
  0x53   :  { %340 = vmatprep.subr.bf16.mxu1 %v469_v0 }
  0x56   :  { %341 = vmatpush3.bf16.msra.mxu1 %v367_v15 }
 0x11c   :  { %v143_v17 = vpop.f32.mrb[0].mxu0 }
 0x11d   :  { %v144_v18 = vadd.f32 %v285_v16, %v143_v17  ;;  %v324_v19 = vpop.f32.mrb[1].mxu0 }
 0x11e   :  { %v146_v20 = vpop.f32.mrb[2].mxu0 }
 0x11f   :  { %v147_v21 = vadd.f32 %v285_v16, %v146_v20  ;;  %v325_v22 = vpop.f32.mrb[3].mxu0  ;;  %v150_v23 = vmax.f32 %v144_v18, 0.0 }
 0x121   :  { %v151_v24 = vmax.f32 %v147_v21, 0.0 }
 0x123   :  { %v152_v25 = vpack.c.bf16 %v151_v24, %v150_v23 }
 0x125   :  { %343 = vmatmul.mubr.bf16.vlgmr.msra.gmra.mrb[0].mxu1 %v152_v25 }
 0x1f8   :  { %v258_v27 = vpop.f32.mrb[0].mxu1 }
 0x1f9   :  { %v259_v28 = vadd.f32 %v291_v26, %v258_v27  ;;  %v344_v29 = vpop.f32.mrb[1].mxu1 }
 0x1fa   :  { %v261_v30 = vpop.f32.mrb[2].mxu1 }
 0x1fb   :  { %265 = vst [vmem:[#allocation8] sm:$0xff] %v259_v28  ;;  %v262_v31 = vadd.f32 %v291_v26, %v261_v30  ;;  %v345_v32 = vpop.f32.mrb[3].mxu1 }
 0x1fd   :  { %266 = vst [vmem:[#allocation8 + $0x8] sm:$0xff] %v262_v31 }
 0x1fe   :  { %445 = shalt.err (!%p442_p0)
}
 0x1ff   :  { %s446_s12 = scalar_lea.hbm %s573_s5, 256 }
 0x200   :  { %p447_p1 = scmp.ne.s32.totalorder %s573_s5, %s446_s12  ;;  %p450_p2 = scmp.lt.u32.totalorder %s446_s12, %s573_s5 }
 0x202   :  { %p452_p3 = pnand %p450_p2, %p447_p1 }
 0x204   :  { %455 = shalt.err (!%p452_p3)
}
 0x205   :  { %278 = dma.vmem_to_hbm [thread:$0]  %s273_s10, 256, %s573_s5, [#allocation4], %s466_s1, %s466_s1, %s467_s17  }
 0x206   :  { %460 = dma.done.wait [#allocation4], 256  }
 0x207   :  { %461 = vsyncadd [#allocation4], 4294967040 }
 0x208   :  { %282 = vsyncpa [#allocation3], 1 }
 0x209   :  { %283 = vsyncpa [#allocation6], 1 }
 0x20a   :  { %284 = vsyncpa [#allocation4], 1 }

// kernel: tpu_custom_call.1
= control target key start
LH: loop header
LB: loop body
LE: loop exit
PB: predicated region body
PF: predicated region fallthrough
CT: control target
= control target key end

     0   :  { %10 = vsyncpa [#allocation3], 0  ;;  %s568_s0 = inlined_call_operand.hbm [shape: f32[16,64], index: 0, kind: input, shape index: {}]   ;;  %s569_s1 = inlined_call_operand.hbm [shape: bf16[64,128], index: 1, kind: input, shape index: {}]   ;;  %s570_s2 = inlined_call_operand.vmem [shape: f32[1,128], index: 2, kind: input, shape index: {}]   ;;  %s571_s3 = inlined_call_operand.hbm [shape: bf16[128,128], index: 3, kind: input, shape index: {}]   ;;  %s572_s4 = inlined_call_operand.vmem [shape: f32[1,128], index: 4, kind: input, shape index: {}]   ;;  %s573_s5 = inlined_call_operand.hbm [shape: f32[16,128], index: 5, kind: output, shape index: {}]  }
   0x1   :  { %11 = vsyncpa [#allocation6], 0 }
   0x2   :  { %12 = vsyncpa [#allocation4], 0  ;;  %s462_s18 = smov [#allocation5]   ;;  %s368_s22 = scalar_lea.hbm %s569_s1, 512 }
   0x3   :  { %s30_s19 = sshll.u32 %s462_s18, 4  ;;  %p369_p0 = scmp.ne.s32.totalorder %s569_s1, %s368_s22  ;;  %s31_s19 = int_to_ptr.vmem [resolvable:$true] %s30_s19 }
   0x4   :  { %p372_p1 = scmp.lt.u32.totalorder %s368_s22, %s569_s1 }
   0x6   :  { %p374_p2 = pnand %p372_p1, %p369_p0 }
   0x8   :  { %377 = shalt.err (!%p374_p2)
}
   0x9   :  { %s378_s27 = scalar_lea.vmem %s31_s19, 512  ;;  %p383_p4 = scmp.lt.s32.totalorder %s31_s19, %s31_s19 }
   0xa   :  { %p379_p3 = scmp.ne.s32.totalorder %s31_s19, %s378_s27  ;;  %p384_p5 = scmp.lt.s32.totalorder %s378_s27, %s378_s27 }
   0xc   :  { %p385_p6 = por %p384_p5, %p383_p4 }
   0xe   :  { %p386_p7 = pnand %p385_p6, %p379_p3 }
  0x10   :  { %389 = shalt.err (!%p386_p7)
}
  0x11   :  { %s463_s28 = smov 64   ;;  %s464_s29 = smov 4  }
  0x12   :  { %36 = dma.hbm_to_vmem [thread:$0]  %s569_s1, 512, %s31_s19, [#allocation6], %s463_s28, %s463_s28, %s464_s29  }
  0x13   :  { %s465_s7 = smov [#allocation2]   ;;  %s390_s11 = scalar_lea.hbm %s568_s0, 256 }
  0x14   :  { %s18_s8 = sshll.u32 %s465_s7, 4  ;;  %p391_p8 = scmp.ne.s32.totalorder %s568_s0, %s390_s11  ;;  %s19_s8 = int_to_ptr.vmem [resolvable:$true] %s18_s8 }
  0x15   :  { %p394_p9 = scmp.lt.u32.totalorder %s390_s11, %s568_s0 }
  0x17   :  { %p396_p10 = pnand %p394_p9, %p391_p8 }
  0x19   :  { %399 = shalt.err (!%p396_p10)
}
  0x1a   :  { %s400_s16 = scalar_lea.vmem %s19_s8, 256  ;;  %p405_p12 = scmp.lt.s32.totalorder %s19_s8, %s19_s8 }
  0x1b   :  { %p401_p11 = scmp.ne.s32.totalorder %s19_s8, %s400_s16  ;;  %p406_p13 = scmp.lt.s32.totalorder %s400_s16, %s400_s16 }
  0x1d   :  { %p407_p0 = por %p406_p13, %p405_p12 }
  0x1f   :  { %p408_p1 = pnand %p407_p0, %p401_p11 }
  0x21   :  { %411 = shalt.err (!%p408_p1)
}
  0x22   :  { %s466_s1 = smov 128   ;;  %s467_s17 = smov 8  }
  0x23   :  { %24 = dma.hbm_to_vmem [thread:$0]  %s568_s0, 256, %s19_s8, [#allocation3], %s466_s1, %s466_s1, %s467_s17  }
  0x24   :  { %s468_s20 = smov [#allocation7]   ;;  %s412_s24 = scalar_lea.hbm %s571_s3, 1024 }
  0x25   :  { %s44_s21 = sshll.u32 %s468_s20, 4  ;;  %p413_p2 = scmp.ne.s32.totalorder %s571_s3, %s412_s24  ;;  %s45_s21 = int_to_ptr.vmem [resolvable:$true] %s44_s21 }
  0x26   :  { %p416_p3 = scmp.lt.u32.totalorder %s412_s24, %s571_s3 }
  0x28   :  { %p418_p4 = pnand %p416_p3, %p413_p2 }
  0x2a   :  { %421 = shalt.err (!%p418_p4)
}
  0x2b   :  { %s422_s6 = scalar_lea.vmem %s45_s21, 1024  ;;  %p427_p6 = scmp.lt.s32.totalorder %s45_s21, %s45_s21 }
  0x2c   :  { %p423_p5 = scmp.ne.s32.totalorder %s45_s21, %s422_s6  ;;  %p428_p7 = scmp.lt.s32.totalorder %s422_s6, %s422_s6 }
  0x2e   :  { %p429_p8 = por %p428_p7, %p427_p6 }
  0x30   :  { %p430_p9 = pnand %p429_p8, %p423_p5 }
  0x32   :  { %433 = shalt.err (!%p430_p9)
}
  0x33   :  { %50 = dma.hbm_to_vmem [thread:$0]  %s571_s3, 1024, %s45_s21, [#allocation6], %s463_s28, %s463_s28, %s464_s29  }
  0x34   :  { %456 = dma.done.wait [#allocation3], 256  }
  0x35   :  { %457 = vsyncadd [#allocation3], 4294967040 }
  0x36   :  { %458 = dma.done.wait [#allocation6], 1536  }
  0x37   :  { %459 = vsyncadd [#allocation6], 4294965760  ;;  %v469_v0 = vmov 0.0   ;;  %vm470_vm0 = vmmov 0   ;;  %v356_v1 = vld [vmem:[#allocation5] sm:$0xff]   ;;  %v357_v2 = vld [vmem:[#allocation5 + $0x8] sm:$0xff]  }
  0x38   :  { %314 = vmatprep.subr.bf16.mxu0 %v469_v0  ;;  %322 = vmatprep.mubr.msk.bf16.mxu0 %vm470_vm0, %v469_v0  ;;  %v360_v3 = vld [vmem:[#allocation7] sm:$0xff]   ;;  %v358_v4 = vld [vmem:[#allocation5 + $0x10] sm:$0xff]   ;;  %v361_v5 = vld [vmem:[#allocation7 + $0x8] sm:$0xff]   ;;  %vm105_vm1 = vcmask 523264   ;;  %s471_s9 = smov [#allocation8]  }
  0x39   :  { %326 = vmatprep.subr.bf16.mxu1 %v469_v0  ;;  %342 = vmatprep.mubr.msk.bf16.mxu1 %vm470_vm0, %v469_v0  ;;  %v359_v6 = vld [vmem:[#allocation5 + $0x18] sm:$0xff]   ;;  %v63_v7 = vld [vmem:[#allocation2] sm:$0xff]  ;;  %v364_v12 = vld [vmem:[#allocation7 + $0x20] sm:$0xff]   ;;  %s272_s10 = sshll.u32 %s471_s9, 4  ;;  %s273_s10 = int_to_ptr.vmem [resolvable:$true] %s272_s10 }
  0x3a   :  { %315 = vmatpush3.bf16.msra.mxu0 %v356_v1  ;;  %327 = vmatpush3.bf16.msra.mxu1 %v360_v3  ;;  %v64_v8 = vld [vmem:[#allocation2 + $0x8] sm:$0xff]  ;;  %v362_v9 = vld [vmem:[#allocation7 + $0x10] sm:$0xff]   ;;  %v365_v13 = vld [vmem:[#allocation7 + $0x28] sm:$0xff]   ;;  %p439_p11 = scmp.lt.s32.totalorder %s273_s10, %s273_s10 }
  0x3b   :  { %316 = vmatprep.subr.bf16.mxu0 %v469_v0  ;;  %328 = vmatprep.subr.bf16.mxu1 %v469_v0  ;;  %v65_v10 = vpack.c.bf16 %v64_v8, %v63_v7  ;;  %v363_v11 = vld [vmem:[#allocation7 + $0x18] sm:$0xff]   ;;  %v366_v14 = vld [vmem:[#allocation7 + $0x30] sm:$0xff]  }
  0x3c   :  { %v367_v15 = vld [vmem:[#allocation7 + $0x38] sm:$0xff]   ;;  %v285_v16 = vld [vmem:[%s570_s2] ss:$0 sm:$0xff]  ;;  %s434_s2 = scalar_lea.vmem %s273_s10, 256 }
  0x3d   :  { %v291_v26 = vld [vmem:[%s572_s4] ss:$0 sm:$0xff]  ;;  %p435_p10 = scmp.ne.s32.totalorder %s273_s10, %s434_s2  ;;  %p440_p12 = scmp.lt.s32.totalorder %s434_s2, %s434_s2 }
  0x3e   :  { %317 = vmatpush3.bf16.msra.mxu0 %v357_v2  ;;  %329 = vmatpush3.bf16.msra.mxu1 %v361_v5 }
  0x3f   :  { %318 = vmatprep.subr.bf16.mxu0 %v469_v0  ;;  %330 = vmatprep.subr.bf16.mxu1 %v469_v0  ;;  %p441_p13 = por %p440_p12, %p439_p11 }
  0x41   :  { %p442_p0 = pnand %p441_p13, %p435_p10 }
  0x42   :  { %319 = vmatpush3.bf16.msra.mxu0 %v358_v4  ;;  %331 = vmatpush3.bf16.msra.mxu1 %v362_v9 }
  0x43   :  { %320 = vmatprep.subr.bf16.mxu0 %v469_v0  ;;  %332 = vmatprep.subr.bf16.mxu1 %v469_v0 }
  0x46   :  { %321 = vmatpush3.bf16.msra.mxu0 %v359_v6  ;;  %333 = vmatpush3.bf16.msra.mxu1 %v363_v11 }
  0x47   :  { %334 = vmatprep.subr.bf16.mxu1 %v469_v0 }
  0x49   :  { %323 = vmatmul.mubr.msk.bf16.vlgmr.msra.gmra.mrb[0].mxu0 %vm105_vm1, %v65_v10 }
  0x4a   :  { %335 = vmatpush3.bf16.msra.mxu1 %v364_v12 }
  0x4b   :  { %336 = vmatprep.subr.bf16.mxu1 %v469_v0 }
  0x4e   :  { %337 = vmatpush3.bf16.msra.mxu1 %v365_v13 }
  0x4f   :  { %338 = vmatprep.subr.bf16.mxu1 %v469_v0 }
  0x52   :  { %339 = vmatpush3.bf16.msra.mxu1 %v366_v14 }
  0x53   :  { %340 = vmatprep.subr.bf16.mxu1 %v469_v0 }
  0x56   :  { %341 = vmatpush3.bf16.msra.mxu1 %v367_v15 }
 0x11c   :  { %v143_v17 = vpop.f32.mrb[0].mxu0 }
 0x11d   :  { %v144_v18 = vadd.f32 %v285_v16, %v143_v17  ;;  %v324_v19 = vpop.f32.mrb[1].mxu0 }
 0x11e   :  { %v146_v20 = vpop.f32.mrb[2].mxu0 }
 0x11f   :  { %v147_v21 = vadd.f32 %v285_v16, %v146_v20  ;;  %v325_v22 = vpop.f32.mrb[3].mxu0  ;;  %v150_v23 = vmax.f32 %v144_v18, 0.0 }
 0x121   :  { %v151_v24 = vmax.f32 %v147_v21, 0.0 }
 0x123   :  { %v152_v25 = vpack.c.bf16 %v151_v24, %v150_v23 }
 0x125   :  { %343 = vmatmul.mubr.bf16.vlgmr.msra.gmra.mrb[0].mxu1 %v152_v25 }
 0x1f8   :  { %v258_v27 = vpop.f32.mrb[0].mxu1 }
 0x1f9   :  { %v259_v28 = vadd.f32 %v291_v26, %v258_v27  ;;  %v344_v29 = vpop.f32.mrb[1].mxu1 }
 0x1fa   :  { %v261_v30 = vpop.f32.mrb[2].mxu1 }
 0x1fb   :  { %265 = vst [vmem:[#allocation8] sm:$0xff] %v259_v28  ;;  %v262_v31 = vadd.f32 %v291_v26, %v261_v30  ;;  %v345_v32 = vpop.f32.mrb[3].mxu1 }
 0x1fd   :  { %266 = vst [vmem:[#allocation8 + $0x8] sm:$0xff] %v262_v31 }
 0x1fe   :  { %445 = shalt.err (!%p442_p0)
}
 0x1ff   :  { %s446_s12 = scalar_lea.hbm %s573_s5, 256 }
 0x200   :  { %p447_p1 = scmp.ne.s32.totalorder %s573_s5, %s446_s12  ;;  %p450_p2 = scmp.lt.u32.totalorder %s446_s12, %s573_s5 }
 0x202   :  { %p452_p3 = pnand %p450_p2, %p447_p1 }
 0x204   :  { %455 = shalt.err (!%p452_p3)
}
 0x205   :  { %278 = dma.vmem_to_hbm [thread:$0]  %s273_s10, 256, %s573_s5, [#allocation4], %s466_s1, %s466_s1, %s467_s17  }
 0x206   :  { %460 = dma.done.wait [#allocation4], 256  }
 0x207   :  { %461 = vsyncadd [#allocation4], 4294967040 }
 0x208   :  { %282 = vsyncpa [#allocation3], 1 }
 0x209   :  { %283 = vsyncpa [#allocation6], 1 }
 0x20a   :  { %284 = vsyncpa [#allocation4], 1 }

</bundles_post_ra>
